<compile_context>
chip_gen: v7x
topology: tpu7x:2x2x1
jax: 0.10.0
libtpu: 0.0.40
codegen_flags: <defaults>
</compile_context>

<pallas_src>
import functools

import jax
import jax.numpy as jnp
from jax.experimental import pallas as pl
from jax.experimental.pallas import tpu as pltpu

INPUT_SIZE = 1
HIDDEN = 24
OUTPUT_SIZE = 5
ROWS_PAD = 8  # output rows padded 5 -> 8 for sublane-dense stores

# Conservative VMEM bytes per batch column:
#   f32 hidden temp (24*4=96) + bf16 hidden copy (24*2=48)
#   + f32 fc2 result (8*4=32) + double-buffered x (4*2) + out (8*4*2) = ~248
_BYTES_PER_COL = 288


def _round_up(a, m):
    return ((a + m - 1) // m) * m


def _vmem_budget_bytes():
    """Generation-aware VMEM budget (leave headroom below the physical size)."""
    try:
        cap = int(pltpu.get_tpu_info().vmem_capacity_bytes)
    except Exception:
        cap = 64 << 20  # conservative fallback: assume v7x-sized (64 MiB) VMEM
    # ~75% of physical: ~48 MiB on v7x, capped at ~96-100 MiB on v5e/v6e.
    return min((cap * 3) // 4, 100 << 20)


def _choose_tiling(batch, tile_b_cap):
    """Pick a lane tile size (multiple of 128) and a matching VMEM limit."""
    padded_b = _round_up(max(int(batch), 1), 128)
    budget = _vmem_budget_bytes()
    max_cols = max(128, (((budget - (2 << 20)) // _BYTES_PER_COL) // 128) * 128)

    tile_b = min(_round_up(int(tile_b_cap), 128), padded_b, max_cols)
    tile_b = max(128, (tile_b // 128) * 128)

    # If the whole batch would be a single tile, split it in two so both v7x
    # TensorCores get work on the "parallel" axis (no-op on v5e/v6e).
    if padded_b > 128 and tile_b >= padded_b:
        tile_b = max(128, _round_up(-(-padded_b // 2), 128))

    vmem_limit = min(budget, max(32 << 20, tile_b * _BYTES_PER_COL + (2 << 20)))
    return tile_b, int(vmem_limit)


def dqn_kernel(x_ref, w1_ref, b1_ref, w2_ref, b2_ref, o_ref):
    # x_ref : (1, TILE_B)            batch on the lane axis
    # w1_ref: (HIDDEN, 1)    f32     fc1 weight, PyTorch (out, in) layout (in == 1)
    # b1_ref: (HIDDEN, 1)    f32
    # w2_ref: (ROWS_PAD, HIDDEN)     fc2 weight padded to 8 rows (rows 5..7 zero)
    # b2_ref: (ROWS_PAD, 1)  f32
    # o_ref : (ROWS_PAD, TILE_B)
    xt = x_ref[...]                                        # (1, TILE_B)

    # fc1 (+bias, +ReLU) on the VPU: rank-1 outer product via broadcast mul.
    h = jnp.maximum(w1_ref[...] * xt + b1_ref[...], 0.0)   # (HIDDEN, TILE_B) f32

    # fc2 on the MXU: (ROWS_PAD, HIDDEN) @ (HIDDEN, TILE_B), f32 accumulation.
    y = jnp.dot(w2_ref[...], h.astype(w2_ref.dtype),
                preferred_element_type=jnp.float32)        # (ROWS_PAD, TILE_B)
    o_ref[...] = (y + b2_ref[...]).astype(o_ref.dtype)


@functools.partial(jax.jit, static_argnames=("tile_b", "vmem_limit", "hidden_dtype"))
def _dqn_forward_impl(x, w1, b1, w2, b2, *, tile_b, vmem_limit, hidden_dtype):
    batch = x.shape[0]
    n_tiles = pl.cdiv(batch, tile_b)

    # Batch onto lanes; no explicit zero-pad copy (ragged last block is fine,
    # there is no cross-column reduction and tail columns never reach HBM).
    xt = x.astype(jnp.float32).reshape(1, batch)

    w1c = w1.reshape(HIDDEN, INPUT_SIZE).astype(jnp.float32)
    b1c = b1.reshape(HIDDEN, 1).astype(jnp.float32)
    # Pad fc2 rows 5 -> 8 (zeros) so the output store is sublane-dense.
    w2p = jnp.zeros((ROWS_PAD, HIDDEN), hidden_dtype).at[:OUTPUT_SIZE].set(
        w2.reshape(OUTPUT_SIZE, HIDDEN).astype(hidden_dtype))
    b2p = jnp.zeros((ROWS_PAD, 1), jnp.float32).at[:OUTPUT_SIZE].set(
        b2.reshape(OUTPUT_SIZE, 1).astype(jnp.float32))

    out = pl.pallas_call(
        dqn_kernel,
        out_shape=jax.ShapeDtypeStruct((ROWS_PAD, batch), jnp.float32),
        grid=(n_tiles,),
        in_specs=[
            pl.BlockSpec((1, tile_b), lambda i: (0, i)),                 # x tile
            pl.BlockSpec((HIDDEN, INPUT_SIZE), lambda i: (0, 0)),        # w1 (resident)
            pl.BlockSpec((HIDDEN, 1), lambda i: (0, 0)),                 # b1 (resident)
            pl.BlockSpec((ROWS_PAD, HIDDEN), lambda i: (0, 0)),          # w2 (resident)
            pl.BlockSpec((ROWS_PAD, 1), lambda i: (0, 0)),               # b2 (resident)
        ],
        out_specs=pl.BlockSpec((ROWS_PAD, tile_b), lambda i: (0, i)),
        compiler_params=pltpu.CompilerParams(
            dimension_semantics=("parallel",),  # v7x: shard batch tiles across both TCs
            vmem_limit_bytes=vmem_limit,
        ),
    )(xt, w1c, b1c, w2p, b2p)

    # Drop the zero-padded rows; keep the lane-major (OUTPUT_SIZE, batch) slab.
    return out[:OUTPUT_SIZE, :]


def dqn_forward_lane_major(x, w1, b1, w2, b2, *, tile_b_cap=32768,
                           hidden_dtype=jnp.bfloat16):
    """Fast path: Q-values as (OUTPUT_SIZE, B), lane-dense, no output transpose."""
    tile_b, vmem_limit = _choose_tiling(x.shape[0], tile_b_cap)
    return _dqn_forward_impl(x, w1, b1, w2, b2, tile_b=tile_b,
                             vmem_limit=vmem_limit, hidden_dtype=hidden_dtype)


def dqn_forward(x, w1, b1, w2, b2, *, tile_b_cap=32768, hidden_dtype=jnp.bfloat16):
    """PyTorch semantics: x (B, 1) -> Q-values (B, OUTPUT_SIZE).

    For huge batches prefer dqn_forward_lane_major (or fuse an argmax epilogue
    downstream) to avoid the extra HBM pass of the final transpose.
    """
    qT = dqn_forward_lane_major(x, w1, b1, w2, b2, tile_b_cap=tile_b_cap,
                                hidden_dtype=hidden_dtype)
    return qT.T


def init_params(key):
    """nn.Linear-style init (uniform +-1/sqrt(fan_in)), PyTorch (out, in) layout."""
    k1, k2, k3, k4 = jax.random.split(key, 4)
    bound1 = 1.0 / jnp.sqrt(float(INPUT_SIZE))
    bound2 = 1.0 / jnp.sqrt(float(HIDDEN))
    w1 = jax.random.uniform(k1, (HIDDEN, INPUT_SIZE), jnp.float32, -bound1, bound1)
    b1 = jax.random.uniform(k2, (HIDDEN,), jnp.float32, -bound1, bound1)
    w2 = jax.random.uniform(k3, (OUTPUT_SIZE, HIDDEN), jnp.float32, -bound2, bound2)
    b2 = jax.random.uniform(k4, (OUTPUT_SIZE,), jnp.float32, -bound2, bound2)
    return w1, b1, w2, b2


def _reference(x, w1, b1, w2, b2):
    # nn.Linear semantics: y = x @ W.T + b
    h = jnp.maximum(x @ w1.T + b1, 0.0)
    return h @ w2.T + b2


if __name__ == "__main__":
    key = jax.random.PRNGKey(0)
    kx, kx2, kp = jax.random.split(key, 3)
    w1, b1, w2, b2 = init_params(kp)

    # Small case (single 128-lane tile), f32 hidden path: exact check.
    batch = 8
    x = jax.random.normal(kx, (batch, INPUT_SIZE), jnp.float32)
    ref = _reference(x, w1, b1, w2, b2)

    out_f32 = jax.block_until_ready(
        dqn_forward(x, w1, b1, w2, b2, hidden_dtype=jnp.float32))
    assert out_f32.shape == (batch, OUTPUT_SIZE)
    assert jnp.allclose(out_f32, ref, atol=1e-5, rtol=1e-5)

    # Default (bf16 hidden) path: looser tolerance.
    out_bf16 = jax.block_until_ready(dqn_forward(x, w1, b1, w2, b2))
    assert out_bf16.shape == (batch, OUTPUT_SIZE)
    assert jnp.allclose(out_bf16, ref, atol=2e-2, rtol=2e-2)

    # Larger, non-multiple-of-128 batch: exercises the multi-tile grid with a
    # ragged last block (auto-split into 2 tiles) and the lane-major fast path.
    batch2 = 300
    x2 = jax.random.normal(kx2, (batch2, INPUT_SIZE), jnp.float32)
    ref2 = _reference(x2, w1, b1, w2, b2)

    out2 = jax.block_until_ready(dqn_forward(x2, w1, b1, w2, b2))
    assert out2.shape == (batch2, OUTPUT_SIZE)
    assert jnp.allclose(out2, ref2, atol=2e-2, rtol=2e-2)

    q_lane = jax.block_until_ready(
        dqn_forward_lane_major(x2, w1, b1, w2, b2, tile_b_cap=128))  # force 3 tiles
    assert q_lane.shape == (OUTPUT_SIZE, batch2)
    assert jnp.allclose(q_lane.T, ref2, atol=2e-2, rtol=2e-2)

    print("KERNEL_OK")
</pallas_src>

<mosaic_0001>
module attributes {stable_mosaic.version = 11 : i64} {
  func.func @dqn_kernel(%arg0: i32, %arg1: memref<1x128xf32, #tpu.memory_space<vmem>>, %arg2: memref<24x1xf32, #tpu.memory_space<vmem>>, %arg3: memref<24x1xf32, #tpu.memory_space<vmem>>, %arg4: memref<8x24xf32, #tpu.memory_space<vmem>>, %arg5: memref<8x1xf32, #tpu.memory_space<vmem>>, %arg6: memref<8x128xf32, #tpu.memory_space<vmem>>) attributes {dimension_semantics = [#tpu.dimension_semantics<parallel>], iteration_bounds = array<i64: 1>, scalar_prefetch = 0 : i64, scratch_operands = 0 : i64, tpu.core_type = #tpu.core_type<tc>, window_params = [{transform_indices = @transform_0, window_bounds = array<i64: 1, 128>}, {pipeline_mode = #tpu.pipeline_mode<synchronous>, transform_indices = @transform_1, window_bounds = array<i64: 24, 1>}, {pipeline_mode = #tpu.pipeline_mode<synchronous>, transform_indices = @transform_2, window_bounds = array<i64: 24, 1>}, {pipeline_mode = #tpu.pipeline_mode<synchronous>, transform_indices = @transform_3, window_bounds = array<i64: 8, 24>}, {pipeline_mode = #tpu.pipeline_mode<synchronous>, transform_indices = @transform_4, window_bounds = array<i64: 8, 1>}, {transform_indices = @transform_5, window_bounds = array<i64: 8, 128>}]} {
    %c0 = arith.constant 0 : index
    %c0_0 = arith.constant 0 : index
    %0 = vector.load %arg1[%c0, %c0_0] : memref<1x128xf32, #tpu.memory_space<vmem>>, vector<1x128xf32>
    %c0_1 = arith.constant 0 : index
    %c0_2 = arith.constant 0 : index
    %1 = vector.load %arg2[%c0_1, %c0_2] : memref<24x1xf32, #tpu.memory_space<vmem>>, vector<24x1xf32>
    %2 = vector.broadcast %1 : vector<24x1xf32> to vector<24x128xf32>
    %3 = vector.broadcast %0 : vector<1x128xf32> to vector<24x128xf32>
    %4 = arith.mulf %2, %3 : vector<24x128xf32>
    %c0_3 = arith.constant 0 : index
    %c0_4 = arith.constant 0 : index
    %5 = vector.load %arg3[%c0_3, %c0_4] : memref<24x1xf32, #tpu.memory_space<vmem>>, vector<24x1xf32>
    %6 = vector.broadcast %5 : vector<24x1xf32> to vector<24x128xf32>
    %7 = arith.addf %4, %6 : vector<24x128xf32>
    %cst = arith.constant 0.000000e+00 : f32
    %8 = vector.broadcast %cst : f32 to vector<24x128xf32>
    %9 = arith.maximumf %7, %8 : vector<24x128xf32>
    %c0_5 = arith.constant 0 : index
    %c0_6 = arith.constant 0 : index
    %10 = vector.load %arg4[%c0_5, %c0_6] : memref<8x24xf32, #tpu.memory_space<vmem>>, vector<8x24xf32>
    %cst_7 = arith.constant dense<0.000000e+00> : vector<8x128xf32>
    %11 = tpu.matmul %10, %9, %cst_7 {dimension_numbers = #tpu.dot_dimension_numbers<[1], [0], [0], [1], [0, 0, 1, 1], [], []>} : vector<8x24xf32>, vector<24x128xf32>, vector<8x128xf32> -> vector<8x128xf32>
    %c0_8 = arith.constant 0 : index
    %c0_9 = arith.constant 0 : index
    %12 = vector.load %arg5[%c0_8, %c0_9] : memref<8x1xf32, #tpu.memory_space<vmem>>, vector<8x1xf32>
    %13 = vector.broadcast %12 : vector<8x1xf32> to vector<8x128xf32>
    %14 = arith.addf %11, %13 : vector<8x128xf32>
    %c0_10 = arith.constant 0 : index
    %c0_11 = arith.constant 0 : index
    %15 = vector.load %arg6[%c0_10, %c0_11] : memref<8x128xf32, #tpu.memory_space<vmem>>, vector<8x128xf32>
    tpu.vector_store %arg6[%c0_10, %c0_11], %14 {strides = array<i32>} : memref<8x128xf32, #tpu.memory_space<vmem>>, vector<8x128xf32>,
    return
  }
  func.func @transform_0(%arg0: i32) -> (i32, i32) {
    %c0_i32 = arith.constant 0 : i32
    %c0_i32_0 = arith.constant 0 : i32
    return %c0_i32, %arg0 : i32, i32
  }
  func.func @transform_1(%arg0: i32) -> (i32, i32) {
    %c0_i32 = arith.constant 0 : i32
    %c0_i32_0 = arith.constant 0 : i32
    %c0_i32_1 = arith.constant 0 : i32
    return %c0_i32, %c0_i32_0 : i32, i32
  }
  func.func @transform_2(%arg0: i32) -> (i32, i32) {
    %c0_i32 = arith.constant 0 : i32
    %c0_i32_0 = arith.constant 0 : i32
    %c0_i32_1 = arith.constant 0 : i32
    return %c0_i32, %c0_i32_0 : i32, i32
  }
  func.func @transform_3(%arg0: i32) -> (i32, i32) {
    %c0_i32 = arith.constant 0 : i32
    %c0_i32_0 = arith.constant 0 : i32
    %c0_i32_1 = arith.constant 0 : i32
    return %c0_i32, %c0_i32_0 : i32, i32
  }
  func.func @transform_4(%arg0: i32) -> (i32, i32) {
    %c0_i32 = arith.constant 0 : i32
    %c0_i32_0 = arith.constant 0 : i32
    %c0_i32_1 = arith.constant 0 : i32
    return %c0_i32, %c0_i32_0 : i32, i32
  }
  func.func @transform_5(%arg0: i32) -> (i32, i32) {
    %c0_i32 = arith.constant 0 : i32
    %c0_i32_0 = arith.constant 0 : i32
    return %c0_i32, %arg0 : i32, i32
  }
}

</mosaic_0001>

<bundles_post_ra>
// kernel: _dqn_forward_impl.1
= control target key start
LH: loop header
LB: loop body
LE: loop exit
PB: predicated region body
PF: predicated region fallthrough
CT: control target
= control target key end

     0   :  { %v218_v2 = vmov 0   ;;  %s292_s0 = inlined_call_operand.vmem [shape: f32[1,8], index: 0, kind: input, shape index: {}]   ;;  %s293_s1 = inlined_call_operand.vmem [shape: f32[24,1], index: 1, kind: input, shape index: {}]   ;;  %s294_s2 = inlined_call_operand.vmem [shape: f32[24,1], index: 2, kind: input, shape index: {}]   ;;  %s295_s3 = inlined_call_operand.vmem [shape: f32[8,24], index: 3, kind: input, shape index: {}]   ;;  %s296_s4 = inlined_call_operand.vmem [shape: f32[8,1], index: 4, kind: input, shape index: {}]   ;;  %s297_s5 = inlined_call_operand.hbm [shape: f32[8,8], index: 5, kind: output, shape index: {}]  }
   0x1   :  { %v49_v0 = vld [vmem:[%s294_s2] sm:$0xff]  ;;  %193 = vset.pattern.permute.xlu1 %v218_v2  ;;  %192 = vset.pattern.permute.xlu0 %v218_v2 }
   0x2   :  { %v22_v1 = vld [vmem:[%s293_s1] sm:$0xff]  ;;  %54 = vperm.xlu1 %193, %v49_v0  }
   0x3   :  { %27 = vperm.xlu0 %192, %v22_v1  }
   0x4   :  { %10 = vsyncpa [#allocation3], 0  ;;  %v50_v3 = vld [vmem:[%s294_s2 + $0x8] sm:$0xff]  ;;  %v51_v5 = vld [vmem:[%s294_s2 + $0x10] sm:$0xff]  ;;  %v219_v8 = vmov 0.0|0.0   ;;  %vm220_vm0 = vmmov 0  }
   0x5   :  { %v23_v4 = vld [vmem:[%s293_s1 + $0x8] sm:$0xff]  ;;  %v24_v6 = vld [vmem:[%s293_s1 + $0x10] sm:$0xff]  ;;  %v74_v7 = vld [vmem:[%s296_s4] sm:$0xff]  ;;  %184 = vmatprep.subr.bf16.mxu0 %v219_v8  ;;  %v221_v9 = vmov 0.0   ;;  %vm80_vm1 = vcmask 195584   ;;  %s222_s2 = smov [#allocation2]  }
   0x6   :  { %59 = vperm.xlu1 %193, %v50_v3   ;;  %181 = vmatprep.mubr.msk.f32.mxu0 %vm220_vm0, %v221_v9  ;;  %v169_v10 = vld [vmem:[%s292_s0] ss:$0 sm:$0xff]  ;;  %s161_s4 = sshll.u32 %s222_s2, 4  ;;  %s162_s4 = int_to_ptr.vmem [resolvable:$true] %s161_s4 }
   0x7   :  { %32 = vperm.xlu0 %192, %v23_v4   ;;  %v73_v27 = vld [vmem:[%s295_s3] sm:$0xff]  ;;  %s194_s9 = scalar_lea.vmem %s162_s4, 128  ;;  %p199_p1 = scmp.lt.s32.totalorder %s162_s4, %s162_s4 }
   0x8   :  { %p195_p0 = scmp.ne.s32.totalorder %s162_s4, %s194_s9  ;;  %p200_p2 = scmp.lt.s32.totalorder %s194_s9, %s194_s9 }
   0xa   :  { %64 = vperm.xlu1 %193, %v51_v5   ;;  %p201_p3 = por %p200_p2, %p199_p1 }
   0xb   :  { %37 = vperm.xlu0 %192, %v24_v6  }
   0xc   :  { %p202_p4 = pnand %p201_p3, %p195_p0 }
   0xf   :  { %77 = vperm.xlu0 %192, %v74_v7  }
  0x81   :  { %v55_v11 = vpop.permute.xlu1 %54 }
  0x82   :  { %v28_v12 = vpop.permute.xlu0 %27 }
  0x83   :  { %v46_v13 = vmul.f32 %v169_v10, %v28_v12 }
  0x85   :  { %v60_v14 = vpop.permute.xlu1 %59  ;;  %v67_v16 = vadd.f32 %v55_v11, %v46_v13 }
  0x86   :  { %v33_v15 = vpop.permute.xlu0 %32 }
  0x87   :  { %v47_v17 = vmul.f32 %v169_v10, %v33_v15  ;;  %v70_v20 = vmax.f32 %v67_v16, 0.0 }
  0x89   :  { %v68_v18 = vadd.f32 %v60_v14, %v47_v17  ;;  %v65_v23 = vpop.permute.xlu1 %64 }
  0x8a   :  { %v38_v19 = vpop.permute.xlu0 %37 }
  0x8b   :  { %v71_v21 = vmax.f32 %v68_v18, 0.0  ;;  %v48_v22 = vmul.f32 %v169_v10, %v38_v19 }
  0x8d   :  { %v69_v24 = vadd.f32 %v65_v23, %v48_v22  ;;  %v185_v25 = vpack.c.bf16 %v71_v21, %v70_v20 }
  0x8e   :  { %v78_v28 = vpop.permute.xlu0 %77 }
  0x8f   :  { %186 = vmatpush3.bf16.msra.mxu0 %v185_v25  ;;  %v72_v26 = vmax.f32 %v69_v24, 0.0 }
  0x90   :  { %179 = vmatprep.subr.mxu0 %v221_v9 }
  0x93   :  { %180 = vmatpush3.msra.mxu0 %v72_v26 }
  0x94   :  { %182 = vmatmul.mubr.msk.f32.vlgmr.msra.gmra.mrb[0].mxu0 %vm80_vm1, %v73_v27 }
 0x167   :  { %v150_v29 = vpop.f32.mrb[0].mxu0 }
 0x168   :  { %v151_v30 = vadd.f32 %v150_v29, %v78_v28  ;;  %v183_v31 = vpop.f32.mrb[1].mxu0 }
 0x16a   :  { %154 = vst [vmem:[#allocation2] sm:$0xff] %v151_v30 }
 0x16b   :  { %205 = shalt.err (!%p202_p4)
}
 0x16c   :  { %s206_s11 = scalar_lea.hbm %s297_s5, 128 }
 0x16d   :  { %p207_p5 = scmp.ne.s32.totalorder %s297_s5, %s206_s11  ;;  %p210_p6 = scmp.lt.u32.totalorder %s206_s11, %s297_s5 }
 0x16f   :  { %p212_p7 = pnand %p210_p6, %p207_p5 }
 0x171   :  { %215 = shalt.err (!%p212_p7)
}
 0x172   :  { %164 = dma.vmem_to_hbm [thread:$0]  %s162_s4, 128, %s297_s5, [#allocation3]  }
 0x173   :  { %216 = dma.done.wait [#allocation3], 128  }
 0x174   :  { %217 = vsyncadd [#allocation3], 4294967168 }
 0x175   :  { %168 = vsyncpa [#allocation3], 1 }

</bundles_post_ra>
